<compile_context>
chip_gen: v7x
topology: tpu7x:2x2x1
jax: 0.10.0
libtpu: 0.0.40
codegen_flags: <defaults>
</compile_context>

<pallas_src>
import functools

import jax
import jax.numpy as jnp
from jax.experimental import pallas as pl
from jax.experimental.pallas import tpu as pltpu

_SUBLANE = 8
_MAX_BLOCK_BATCH = 4096


def _round_up(x, m):
    return ((x + m - 1) // m) * m


def _vmem_budget_bytes():
    """~Half of physical per-TensorCore VMEM (64 MiB on v5e/v6e, 32 MiB on v7x)."""
    try:
        cap = int(getattr(pltpu.get_tpu_info(), "vmem_capacity_bytes", 0))
    except Exception:
        cap = 0
    if cap <= 0:
        cap = 64 * 1024 * 1024            # conservative fallback (v7x per-TC)
    return int(min(96 << 20, max(32 << 20, cap // 2)))


def coupling_kernel(mask_ref, z_ref, w1_ref, b1_ref, ws2_ref, bs2_ref,
                    wt2_ref, bt2_ref, x_ref, logdet_ref, *, matmul_dtype):
    """One batch tile: 2-layer scale/translation MLPs + affine coupling."""
    H = ws2_ref.shape[0]
    z = z_ref[...]                                    # (TB, D) f32
    mask = mask_ref[...]                              # (1, D)  broadcasts

    # Layer 1 of both nets fused into a single (D, 2H) matmul.  The mask is
    # already folded into w1 (w1 = diag(mask) @ [ws1 | wt1]), so the explicit
    # mask*z multiply is not needed (exact for a binary mask).
    h = jnp.maximum(
        jnp.dot(z.astype(matmul_dtype), w1_ref[...].astype(matmul_dtype),
                preferred_element_type=jnp.float32) + b1_ref[...],
        0.0)                                          # (TB, 2H) f32
    hc = h.astype(matmul_dtype)
    h_s = hc[:, :H]
    h_t = hc[:, H:]

    # scale_net second layer + tanh; translation_net second layer.
    s = jnp.tanh(
        jnp.dot(h_s, ws2_ref[...].astype(matmul_dtype),
                preferred_element_type=jnp.float32) + bs2_ref[...])   # (TB, D)
    t = (jnp.dot(h_t, wt2_ref[...].astype(matmul_dtype),
                 preferred_element_type=jnp.float32) + bt2_ref[...])  # (TB, D)

    inv = 1.0 - mask
    x_ref[...] = (mask * z + inv * (z * jnp.exp(s) + t)).astype(x_ref.dtype)
    logdet_ref[...] = jnp.sum(inv * s, axis=1, keepdims=True)         # (TB, 1)


def _choose_block_batch(B, D, H, budget_bytes):
    """Largest batch tile (multiple of 8, <= 4096) fitting the VMEM budget."""
    # Resident operands (mask + fused layer-1 + both layer-2 weight sets).
    # Counted x2 to stay safe if Buffered(1) falls back to double-buffering.
    resident = 2 * 4 * (D * 2 * H + 2 * H + 2 * (H * D + D) + D)
    # Streamed z/x/logdet tiles (double-buffered) + in-kernel intermediates
    # (h, h_s/h_t copies, s, t, exp(s), combine temporaries).
    per_row = 4 * (2 * (2 * D + 1) + 4 * H + 6 * D)
    avail = int(0.8 * budget_bytes) - resident
    tb = max(_SUBLANE, avail // per_row)
    tb = min((tb // _SUBLANE) * _SUBLANE, _MAX_BLOCK_BATCH)
    b8 = _round_up(B, _SUBLANE)
    if tb >= b8:
        # Guarantee >= 2 grid steps when the batch allows it so the "parallel"
        # axis can shard across both v7x TensorCores (cheap no-op on v5e/v6e).
        tb = b8 if b8 < 2 * _SUBLANE else _round_up((b8 + 1) // 2, _SUBLANE)
    return max(_SUBLANE, tb)


def masked_coupling_forward(z, mask, params, *, block_batch=None,
                            matmul_dtype=jnp.float32):
    """z: (B, D) f32, mask: (D,) binary f32, params: dict of MLP weights."""
    f32 = jnp.float32
    B, D = z.shape
    H = params["ws1"].shape[1]

    budget = _vmem_budget_bytes()
    if block_batch is None:
        TB = _choose_block_batch(B, D, H, budget)
    else:
        TB = _round_up(block_batch, _SUBLANE)
    Bp = _round_up(B, TB)
    grid = (Bp // TB,)

    # Feature dim stays unpadded in HBM; only an optional batch pad up to a
    # multiple of the batch tile (cheap, sliced off again afterwards).
    zp = z.astype(f32)
    if Bp != B:
        zp = jnp.pad(zp, ((0, Bp - B), (0, 0)))

    mask2d = mask.astype(f32).reshape(1, D)
    # Fused layer-1 weights with the mask folded in (exact for binary masks).
    w1 = mask2d.reshape(D, 1) * jnp.concatenate(
        [params["ws1"].astype(f32), params["wt1"].astype(f32)], axis=1)
    b1 = jnp.concatenate(
        [params["bs1"].astype(f32), params["bt1"].astype(f32)], axis=1)
    ws2 = params["ws2"].astype(f32)
    bs2 = params["bs2"].astype(f32).reshape(1, D)
    wt2 = params["wt2"].astype(f32)
    bt2 = params["bt2"].astype(f32).reshape(1, D)

    flops = 8 * Bp * D * H
    bytes_accessed = 4 * (2 * Bp * D + Bp
                          + D * 2 * H + 2 * H + 2 * (H * D + D) + D)
    kernel = functools.partial(coupling_kernel, matmul_dtype=matmul_dtype)

    def run(single_buffer_weights):
        def resident(shape):
            idx = lambda i: (0,) * len(shape)
            if single_buffer_weights:
                # Constant index map -> one buffer is enough; halves the
                # resident-weight VMEM footprint vs default double-buffering.
                return pl.BlockSpec(shape, idx, pipeline_mode=pl.Buffered(1))
            return pl.BlockSpec(shape, idx)

        return pl.pallas_call(
            kernel,
            out_shape=(jax.ShapeDtypeStruct((Bp, D), f32),
                       jax.ShapeDtypeStruct((Bp, 1), f32)),
            grid=grid,
            in_specs=[
                resident((1, D)),                            # mask
                pl.BlockSpec((TB, D), lambda i: (i, 0)),     # z (streamed)
                resident((D, 2 * H)), resident((1, 2 * H)),  # fused layer 1
                resident((H, D)), resident((1, D)),          # scale layer 2
                resident((H, D)), resident((1, D)),          # transl. layer 2
            ],
            out_specs=(
                pl.BlockSpec((TB, D), lambda i: (i, 0)),     # x
                pl.BlockSpec((TB, 1), lambda i: (i, 0)),     # log_det
            ),
            compiler_params=pltpu.CompilerParams(
                dimension_semantics=("parallel",),
                vmem_limit_bytes=budget,
            ),
            cost_estimate=pl.CostEstimate(
                flops=flops,
                transcendentals=2 * Bp * D,
                bytes_accessed=bytes_accessed,
            ),
        )(mask2d, zp, w1, b1, ws2, bs2, wt2, bt2)

    try:
        x, logdet = run(single_buffer_weights=True)
    except Exception:
        # Fallback if this JAX/Mosaic build rejects pl.Buffered(1) on the
        # implicit pipeline; weights then use the default double-buffering.
        x, logdet = run(single_buffer_weights=False)

    if Bp != B:
        x = x[:B]
        logdet = logdet[:B]
    return x, logdet[:, 0]


def reference_forward(z, mask, params):
    """Pure-JAX reference of the PyTorch forward pass."""
    zm = mask[None, :] * z
    h_s = jnp.maximum(zm @ params["ws1"] + params["bs1"], 0.0)
    s = jnp.tanh(h_s @ params["ws2"] + params["bs2"])
    h_t = jnp.maximum(zm @ params["wt1"] + params["bt1"], 0.0)
    t = h_t @ params["wt2"] + params["bt2"]
    inv = 1.0 - mask[None, :]
    x = mask[None, :] * z + inv * (z * jnp.exp(s) + t)
    log_det = jnp.sum(inv * s, axis=1)
    return x, log_det


if __name__ == "__main__":
    B, D, H = 32, 16, 32   # batch, feature_dim, hidden

    key = jax.random.PRNGKey(0)
    k_z, k1, k2, k3, k4 = jax.random.split(key, 5)

    z = jax.random.normal(k_z, (B, D), dtype=jnp.float32)
    mask = (jnp.arange(D) % 2).astype(jnp.float32)   # checkerboard mask

    def lin_init(k, fan_in, shape):
        return (jax.random.normal(k, shape, dtype=jnp.float32)
                * (1.0 / jnp.sqrt(fan_in)))

    params = {
        "ws1": lin_init(k1, D, (D, H)), "bs1": jnp.zeros((1, H), jnp.float32),
        "ws2": lin_init(k2, H, (H, D)), "bs2": jnp.zeros((1, D), jnp.float32),
        "wt1": lin_init(k3, D, (D, H)), "bt1": jnp.zeros((1, H), jnp.float32),
        "wt2": lin_init(k4, H, (H, D)), "bt2": jnp.zeros((1, D), jnp.float32),
    }

    x_ref, log_det_ref = reference_forward(z, mask, params)

    # Small explicit batch tile -> exercises the multi-step (grid=(4,)) path.
    x, log_det = masked_coupling_forward(z, mask, params, block_batch=8)
    jax.block_until_ready((x, log_det))
    assert jnp.allclose(x, x_ref, atol=1e-5, rtol=1e-5), "x mismatch (tiled)"
    assert jnp.allclose(log_det, log_det_ref, atol=1e-5, rtol=1e-5), \
        "log_det mismatch (tiled)"

    # Auto-sized batch tile (>= 2 grid steps so v7x uses both TensorCores).
    x2, log_det2 = masked_coupling_forward(z, mask, params)
    jax.block_until_ready((x2, log_det2))
    assert jnp.allclose(x2, x_ref, atol=1e-5, rtol=1e-5), "x mismatch (auto)"
    assert jnp.allclose(log_det2, log_det_ref, atol=1e-5, rtol=1e-5), \
        "log_det mismatch (auto)"

    print("KERNEL_OK")
</pallas_src>

<mosaic_0001>
module attributes {stable_mosaic.version = 11 : i64} {
  func.func @coupling_kernel(%arg0: i32, %arg1: memref<1x16xf32, #tpu.memory_space<vmem>>, %arg2: memref<8x16xf32, #tpu.memory_space<vmem>>, %arg3: memref<16x64xf32, #tpu.memory_space<vmem>>, %arg4: memref<1x64xf32, #tpu.memory_space<vmem>>, %arg5: memref<32x16xf32, #tpu.memory_space<vmem>>, %arg6: memref<1x16xf32, #tpu.memory_space<vmem>>, %arg7: memref<32x16xf32, #tpu.memory_space<vmem>>, %arg8: memref<1x16xf32, #tpu.memory_space<vmem>>, %arg9: memref<8x16xf32, #tpu.memory_space<vmem>>, %arg10: memref<8x1xf32, #tpu.memory_space<vmem>>) attributes {dimension_semantics = [#tpu.dimension_semantics<parallel>], iteration_bounds = array<i64: 4>, scalar_prefetch = 0 : i64, scratch_operands = 0 : i64, tpu.core_type = #tpu.core_type<tc>, window_params = [{pipeline_mode = #tpu.pipeline_mode<synchronous>, transform_indices = @transform_0, window_bounds = array<i64: 1, 16>}, {transform_indices = @transform_1, window_bounds = array<i64: 8, 16>}, {pipeline_mode = #tpu.pipeline_mode<synchronous>, transform_indices = @transform_2, window_bounds = array<i64: 16, 64>}, {pipeline_mode = #tpu.pipeline_mode<synchronous>, transform_indices = @transform_3, window_bounds = array<i64: 1, 64>}, {pipeline_mode = #tpu.pipeline_mode<synchronous>, transform_indices = @transform_4, window_bounds = array<i64: 32, 16>}, {pipeline_mode = #tpu.pipeline_mode<synchronous>, transform_indices = @transform_5, window_bounds = array<i64: 1, 16>}, {pipeline_mode = #tpu.pipeline_mode<synchronous>, transform_indices = @transform_6, window_bounds = array<i64: 32, 16>}, {pipeline_mode = #tpu.pipeline_mode<synchronous>, transform_indices = @transform_7, window_bounds = array<i64: 1, 16>}, {transform_indices = @transform_8, window_bounds = array<i64: 8, 16>}, {transform_indices = @transform_9, window_bounds = array<i64: 8, 1>}]} {
    %c0 = arith.constant 0 : index
    %c0_0 = arith.constant 0 : index
    %0 = vector.load %arg2[%c0, %c0_0] : memref<8x16xf32, #tpu.memory_space<vmem>>, vector<8x16xf32>
    %c0_1 = arith.constant 0 : index
    %c0_2 = arith.constant 0 : index
    %1 = vector.load %arg1[%c0_1, %c0_2] : memref<1x16xf32, #tpu.memory_space<vmem>>, vector<1x16xf32>
    %c0_3 = arith.constant 0 : index
    %c0_4 = arith.constant 0 : index
    %2 = vector.load %arg3[%c0_3, %c0_4] : memref<16x64xf32, #tpu.memory_space<vmem>>, vector<16x64xf32>
    %cst = arith.constant dense<0.000000e+00> : vector<8x64xf32>
    %3 = tpu.matmul %0, %2, %cst {dimension_numbers = #tpu.dot_dimension_numbers<[1], [0], [0], [1], [0, 0, 1, 1], [], []>} : vector<8x16xf32>, vector<16x64xf32>, vector<8x64xf32> -> vector<8x64xf32>
    %c0_5 = arith.constant 0 : index
    %c0_6 = arith.constant 0 : index
    %4 = vector.load %arg4[%c0_5, %c0_6] : memref<1x64xf32, #tpu.memory_space<vmem>>, vector<1x64xf32>
    %5 = vector.broadcast %4 : vector<1x64xf32> to vector<8x64xf32>
    %6 = arith.addf %3, %5 : vector<8x64xf32>
    %cst_7 = arith.constant 0.000000e+00 : f32
    %7 = vector.broadcast %cst_7 : f32 to vector<8x64xf32>
    %8 = arith.maximumf %6, %7 : vector<8x64xf32>
    %9 = vector.extract_strided_slice %8 {offsets = [0, 0], sizes = [8, 32], strides = [1, 1]} : vector<8x64xf32> to vector<8x32xf32>
    %10 = vector.extract_strided_slice %8 {offsets = [0, 32], sizes = [8, 32], strides = [1, 1]} : vector<8x64xf32> to vector<8x32xf32>
    %c0_8 = arith.constant 0 : index
    %c0_9 = arith.constant 0 : index
    %11 = vector.load %arg5[%c0_8, %c0_9] : memref<32x16xf32, #tpu.memory_space<vmem>>, vector<32x16xf32>
    %cst_10 = arith.constant dense<0.000000e+00> : vector<8x16xf32>
    %12 = tpu.matmul %9, %11, %cst_10 {dimension_numbers = #tpu.dot_dimension_numbers<[1], [0], [0], [1], [0, 0, 1, 1], [], []>} : vector<8x32xf32>, vector<32x16xf32>, vector<8x16xf32> -> vector<8x16xf32>
    %c0_11 = arith.constant 0 : index
    %c0_12 = arith.constant 0 : index
    %13 = vector.load %arg6[%c0_11, %c0_12] : memref<1x16xf32, #tpu.memory_space<vmem>>, vector<1x16xf32>
    %14 = vector.broadcast %13 : vector<1x16xf32> to vector<8x16xf32>
    %15 = arith.addf %12, %14 : vector<8x16xf32>
    %16 = math.tanh %15 : vector<8x16xf32>
    %c0_13 = arith.constant 0 : index
    %c0_14 = arith.constant 0 : index
    %17 = vector.load %arg7[%c0_13, %c0_14] : memref<32x16xf32, #tpu.memory_space<vmem>>, vector<32x16xf32>
    %cst_15 = arith.constant dense<0.000000e+00> : vector<8x16xf32>
    %18 = tpu.matmul %10, %17, %cst_15 {dimension_numbers = #tpu.dot_dimension_numbers<[1], [0], [0], [1], [0, 0, 1, 1], [], []>} : vector<8x32xf32>, vector<32x16xf32>, vector<8x16xf32> -> vector<8x16xf32>
    %c0_16 = arith.constant 0 : index
    %c0_17 = arith.constant 0 : index
    %19 = vector.load %arg8[%c0_16, %c0_17] : memref<1x16xf32, #tpu.memory_space<vmem>>, vector<1x16xf32>
    %20 = vector.broadcast %19 : vector<1x16xf32> to vector<8x16xf32>
    %21 = arith.addf %18, %20 : vector<8x16xf32>
    %cst_18 = arith.constant 1.000000e+00 : f32
    %22 = vector.broadcast %cst_18 : f32 to vector<1x16xf32>
    %23 = arith.subf %22, %1 : vector<1x16xf32>
    %24 = vector.broadcast %1 : vector<1x16xf32> to vector<8x16xf32>
    %25 = arith.mulf %24, %0 : vector<8x16xf32>
    %26 = math.exp %16 : vector<8x16xf32>
    %27 = arith.mulf %0, %26 : vector<8x16xf32>
    %28 = arith.addf %27, %21 : vector<8x16xf32>
    %29 = vector.broadcast %23 : vector<1x16xf32> to vector<8x16xf32>
    %30 = arith.mulf %29, %28 : vector<8x16xf32>
    %31 = arith.addf %25, %30 : vector<8x16xf32>
    %c0_19 = arith.constant 0 : index
    %c0_20 = arith.constant 0 : index
    %32 = vector.load %arg9[%c0_19, %c0_20] : memref<8x16xf32, #tpu.memory_space<vmem>>, vector<8x16xf32>
    tpu.vector_store %arg9[%c0_19, %c0_20], %31 {strides = array<i32>} : memref<8x16xf32, #tpu.memory_space<vmem>>, vector<8x16xf32>,
    %33 = vector.broadcast %23 : vector<1x16xf32> to vector<8x16xf32>
    %34 = arith.mulf %33, %16 : vector<8x16xf32>
    %cst_21 = arith.constant dense<0.000000e+00> : vector<8xf32>
    %35 = vector.multi_reduction <add>, %34, %cst_21 [1] : vector<8x16xf32> to vector<8xf32>
    %36 = vector.shape_cast %35 : vector<8xf32> to vector<8x1xf32>
    %c0_22 = arith.constant 0 : index
    %c0_23 = arith.constant 0 : index
    %37 = vector.load %arg10[%c0_22, %c0_23] : memref<8x1xf32, #tpu.memory_space<vmem>>, vector<8x1xf32>
    tpu.vector_store %arg10[%c0_22, %c0_23], %36 {strides = array<i32>} : memref<8x1xf32, #tpu.memory_space<vmem>>, vector<8x1xf32>,
    return
  }
  func.func @transform_0(%arg0: i32) -> (i32, i32) {
    %c0_i32 = arith.constant 0 : i32
    %c0_i32_0 = arith.constant 0 : i32
    %c0_i32_1 = arith.constant 0 : i32
    return %c0_i32, %c0_i32_0 : i32, i32
  }
  func.func @transform_1(%arg0: i32) -> (i32, i32) {
    %c0_i32 = arith.constant 0 : i32
    %c0_i32_0 = arith.constant 0 : i32
    return %arg0, %c0_i32 : i32, i32
  }
  func.func @transform_2(%arg0: i32) -> (i32, i32) {
    %c0_i32 = arith.constant 0 : i32
    %c0_i32_0 = arith.constant 0 : i32
    %c0_i32_1 = arith.constant 0 : i32
    return %c0_i32, %c0_i32_0 : i32, i32
  }
  func.func @transform_3(%arg0: i32) -> (i32, i32) {
    %c0_i32 = arith.constant 0 : i32
    %c0_i32_0 = arith.constant 0 : i32
    %c0_i32_1 = arith.constant 0 : i32
    return %c0_i32, %c0_i32_0 : i32, i32
  }
  func.func @transform_4(%arg0: i32) -> (i32, i32) {
    %c0_i32 = arith.constant 0 : i32
    %c0_i32_0 = arith.constant 0 : i32
    %c0_i32_1 = arith.constant 0 : i32
    return %c0_i32, %c0_i32_0 : i32, i32
  }
  func.func @transform_5(%arg0: i32) -> (i32, i32) {
    %c0_i32 = arith.constant 0 : i32
    %c0_i32_0 = arith.constant 0 : i32
    %c0_i32_1 = arith.constant 0 : i32
    return %c0_i32, %c0_i32_0 : i32, i32
  }
  func.func @transform_6(%arg0: i32) -> (i32, i32) {
    %c0_i32 = arith.constant 0 : i32
    %c0_i32_0 = arith.constant 0 : i32
    %c0_i32_1 = arith.constant 0 : i32
    return %c0_i32, %c0_i32_0 : i32, i32
  }
  func.func @transform_7(%arg0: i32) -> (i32, i32) {
    %c0_i32 = arith.constant 0 : i32
    %c0_i32_0 = arith.constant 0 : i32
    %c0_i32_1 = arith.constant 0 : i32
    return %c0_i32, %c0_i32_0 : i32, i32
  }
  func.func @transform_8(%arg0: i32) -> (i32, i32) {
    %c0_i32 = arith.constant 0 : i32
    %c0_i32_0 = arith.constant 0 : i32
    return %arg0, %c0_i32 : i32, i32
  }
  func.func @transform_9(%arg0: i32) -> (i32, i32) {
    %c0_i32 = arith.constant 0 : i32
    %c0_i32_0 = arith.constant 0 : i32
    return %arg0, %c0_i32 : i32, i32
  }
}

module attributes {stable_mosaic.version = 11 : i64} {
  func.func @coupling_kernel(%arg0: i32, %arg1: memref<1x16xf32, #tpu.memory_space<vmem>>, %arg2: memref<8x16xf32, #tpu.memory_space<vmem>>, %arg3: memref<16x64xf32, #tpu.memory_space<vmem>>, %arg4: memref<1x64xf32, #tpu.memory_space<vmem>>, %arg5: memref<32x16xf32, #tpu.memory_space<vmem>>, %arg6: memref<1x16xf32, #tpu.memory_space<vmem>>, %arg7: memref<32x16xf32, #tpu.memory_space<vmem>>, %arg8: memref<1x16xf32, #tpu.memory_space<vmem>>, %arg9: memref<8x16xf32, #tpu.memory_space<vmem>>, %arg10: memref<8x1xf32, #tpu.memory_space<vmem>>) attributes {dimension_semantics = [#tpu.dimension_semantics<parallel>], iteration_bounds = array<i64: 4>, scalar_prefetch = 0 : i64, scratch_operands = 0 : i64, tpu.core_type = #tpu.core_type<tc>, window_params = [{pipeline_mode = #tpu.pipeline_mode<synchronous>, transform_indices = @transform_0, window_bounds = array<i64: 1, 16>}, {transform_indices = @transform_1, window_bounds = array<i64: 8, 16>}, {pipeline_mode = #tpu.pipeline_mode<synchronous>, transform_indices = @transform_2, window_bounds = array<i64: 16, 64>}, {pipeline_mode = #tpu.pipeline_mode<synchronous>, transform_indices = @transform_3, window_bounds = array<i64: 1, 64>}, {pipeline_mode = #tpu.pipeline_mode<synchronous>, transform_indices = @transform_4, window_bounds = array<i64: 32, 16>}, {pipeline_mode = #tpu.pipeline_mode<synchronous>, transform_indices = @transform_5, window_bounds = array<i64: 1, 16>}, {pipeline_mode = #tpu.pipeline_mode<synchronous>, transform_indices = @transform_6, window_bounds = array<i64: 32, 16>}, {pipeline_mode = #tpu.pipeline_mode<synchronous>, transform_indices = @transform_7, window_bounds = array<i64: 1, 16>}, {transform_indices = @transform_8, window_bounds = array<i64: 8, 16>}, {transform_indices = @transform_9, window_bounds = array<i64: 8, 1>}]} {
    %c0 = arith.constant 0 : index
    %c0_0 = arith.constant 0 : index
    %0 = vector.load %arg2[%c0, %c0_0] : memref<8x16xf32, #tpu.memory_space<vmem>>, vector<8x16xf32>
    %c0_1 = arith.constant 0 : index
    %c0_2 = arith.constant 0 : index
    %1 = vector.load %arg1[%c0_1, %c0_2] : memref<1x16xf32, #tpu.memory_space<vmem>>, vector<1x16xf32>
    %c0_3 = arith.constant 0 : index
    %c0_4 = arith.constant 0 : index
    %2 = vector.load %arg3[%c0_3, %c0_4] : memref<16x64xf32, #tpu.memory_space<vmem>>, vector<16x64xf32>
    %cst = arith.constant dense<0.000000e+00> : vector<8x64xf32>
    %3 = tpu.matmul %0, %2, %cst {dimension_numbers = #tpu.dot_dimension_numbers<[1], [0], [0], [1], [0, 0, 1, 1], [], []>} : vector<8x16xf32>, vector<16x64xf32>, vector<8x64xf32> -> vector<8x64xf32>
    %c0_5 = arith.constant 0 : index
    %c0_6 = arith.constant 0 : index
    %4 = vector.load %arg4[%c0_5, %c0_6] : memref<1x64xf32, #tpu.memory_space<vmem>>, vector<1x64xf32>
    %5 = vector.broadcast %4 : vector<1x64xf32> to vector<8x64xf32>
    %6 = arith.addf %3, %5 : vector<8x64xf32>
    %cst_7 = arith.constant 0.000000e+00 : f32
    %7 = vector.broadcast %cst_7 : f32 to vector<8x64xf32>
    %8 = arith.maximumf %6, %7 : vector<8x64xf32>
    %9 = vector.extract_strided_slice %8 {offsets = [0, 0], sizes = [8, 32], strides = [1, 1]} : vector<8x64xf32> to vector<8x32xf32>
    %10 = vector.extract_strided_slice %8 {offsets = [0, 32], sizes = [8, 32], strides = [1, 1]} : vector<8x64xf32> to vector<8x32xf32>
    %c0_8 = arith.constant 0 : index
    %c0_9 = arith.constant 0 : index
    %11 = vector.load %arg5[%c0_8, %c0_9] : memref<32x16xf32, #tpu.memory_space<vmem>>, vector<32x16xf32>
    %cst_10 = arith.constant dense<0.000000e+00> : vector<8x16xf32>
    %12 = tpu.matmul %9, %11, %cst_10 {dimension_numbers = #tpu.dot_dimension_numbers<[1], [0], [0], [1], [0, 0, 1, 1], [], []>} : vector<8x32xf32>, vector<32x16xf32>, vector<8x16xf32> -> vector<8x16xf32>
    %c0_11 = arith.constant 0 : index
    %c0_12 = arith.constant 0 : index
    %13 = vector.load %arg6[%c0_11, %c0_12] : memref<1x16xf32, #tpu.memory_space<vmem>>, vector<1x16xf32>
    %14 = vector.broadcast %13 : vector<1x16xf32> to vector<8x16xf32>
    %15 = arith.addf %12, %14 : vector<8x16xf32>
    %16 = math.tanh %15 : vector<8x16xf32>
    %c0_13 = arith.constant 0 : index
    %c0_14 = arith.constant 0 : index
    %17 = vector.load %arg7[%c0_13, %c0_14] : memref<32x16xf32, #tpu.memory_space<vmem>>, vector<32x16xf32>
    %cst_15 = arith.constant dense<0.000000e+00> : vector<8x16xf32>
    %18 = tpu.matmul %10, %17, %cst_15 {dimension_numbers = #tpu.dot_dimension_numbers<[1], [0], [0], [1], [0, 0, 1, 1], [], []>} : vector<8x32xf32>, vector<32x16xf32>, vector<8x16xf32> -> vector<8x16xf32>
    %c0_16 = arith.constant 0 : index
    %c0_17 = arith.constant 0 : index
    %19 = vector.load %arg8[%c0_16, %c0_17] : memref<1x16xf32, #tpu.memory_space<vmem>>, vector<1x16xf32>
    %20 = vector.broadcast %19 : vector<1x16xf32> to vector<8x16xf32>
    %21 = arith.addf %18, %20 : vector<8x16xf32>
    %cst_18 = arith.constant 1.000000e+00 : f32
    %22 = vector.broadcast %cst_18 : f32 to vector<1x16xf32>
    %23 = arith.subf %22, %1 : vector<1x16xf32>
    %24 = vector.broadcast %1 : vector<1x16xf32> to vector<8x16xf32>
    %25 = arith.mulf %24, %0 : vector<8x16xf32>
    %26 = math.exp %16 : vector<8x16xf32>
    %27 = arith.mulf %0, %26 : vector<8x16xf32>
    %28 = arith.addf %27, %21 : vector<8x16xf32>
    %29 = vector.broadcast %23 : vector<1x16xf32> to vector<8x16xf32>
    %30 = arith.mulf %29, %28 : vector<8x16xf32>
    %31 = arith.addf %25, %30 : vector<8x16xf32>
    %c0_19 = arith.constant 0 : index
    %c0_20 = arith.constant 0 : index
    %32 = vector.load %arg9[%c0_19, %c0_20] : memref<8x16xf32, #tpu.memory_space<vmem>>, vector<8x16xf32>
    tpu.vector_store %arg9[%c0_19, %c0_20], %31 {strides = array<i32>} : memref<8x16xf32, #tpu.memory_space<vmem>>, vector<8x16xf32>,
    %33 = vector.broadcast %23 : vector<1x16xf32> to vector<8x16xf32>
    %34 = arith.mulf %33, %16 : vector<8x16xf32>
    %cst_21 = arith.constant dense<0.000000e+00> : vector<8xf32>
    %35 = vector.multi_reduction <add>, %34, %cst_21 [1] : vector<8x16xf32> to vector<8xf32>
    %36 = vector.shape_cast %35 : vector<8xf32> to vector<8x1xf32>
    %c0_22 = arith.constant 0 : index
    %c0_23 = arith.constant 0 : index
    %37 = vector.load %arg10[%c0_22, %c0_23] : memref<8x1xf32, #tpu.memory_space<vmem>>, vector<8x1xf32>
    tpu.vector_store %arg10[%c0_22, %c0_23], %36 {strides = array<i32>} : memref<8x1xf32, #tpu.memory_space<vmem>>, vector<8x1xf32>,
    return
  }
  func.func @transform_0(%arg0: i32) -> (i32, i32) {
    %c0_i32 = arith.constant 0 : i32
    %c0_i32_0 = arith.constant 0 : i32
    %c0_i32_1 = arith.constant 0 : i32
    return %c0_i32, %c0_i32_0 : i32, i32
  }
  func.func @transform_1(%arg0: i32) -> (i32, i32) {
    %c0_i32 = arith.constant 0 : i32
    %c0_i32_0 = arith.constant 0 : i32
    return %arg0, %c0_i32 : i32, i32
  }
  func.func @transform_2(%arg0: i32) -> (i32, i32) {
    %c0_i32 = arith.constant 0 : i32
    %c0_i32_0 = arith.constant 0 : i32
    %c0_i32_1 = arith.constant 0 : i32
    return %c0_i32, %c0_i32_0 : i32, i32
  }
  func.func @transform_3(%arg0: i32) -> (i32, i32) {
    %c0_i32 = arith.constant 0 : i32
    %c0_i32_0 = arith.constant 0 : i32
    %c0_i32_1 = arith.constant 0 : i32
    return %c0_i32, %c0_i32_0 : i32, i32
  }
  func.func @transform_4(%arg0: i32) -> (i32, i32) {
    %c0_i32 = arith.constant 0 : i32
    %c0_i32_0 = arith.constant 0 : i32
    %c0_i32_1 = arith.constant 0 : i32
    return %c0_i32, %c0_i32_0 : i32, i32
  }
  func.func @transform_5(%arg0: i32) -> (i32, i32) {
    %c0_i32 = arith.constant 0 : i32
    %c0_i32_0 = arith.constant 0 : i32
    %c0_i32_1 = arith.constant 0 : i32
    return %c0_i32, %c0_i32_0 : i32, i32
  }
  func.func @transform_6(%arg0: i32) -> (i32, i32) {
    %c0_i32 = arith.constant 0 : i32
    %c0_i32_0 = arith.constant 0 : i32
    %c0_i32_1 = arith.constant 0 : i32
    return %c0_i32, %c0_i32_0 : i32, i32
  }
  func.func @transform_7(%arg0: i32) -> (i32, i32) {
    %c0_i32 = arith.constant 0 : i32
    %c0_i32_0 = arith.constant 0 : i32
    %c0_i32_1 = arith.constant 0 : i32
    return %c0_i32, %c0_i32_0 : i32, i32
  }
  func.func @transform_8(%arg0: i32) -> (i32, i32) {
    %c0_i32 = arith.constant 0 : i32
    %c0_i32_0 = arith.constant 0 : i32
    return %arg0, %c0_i32 : i32, i32
  }
  func.func @transform_9(%arg0: i32) -> (i32, i32) {
    %c0_i32 = arith.constant 0 : i32
    %c0_i32_0 = arith.constant 0 : i32
    return %arg0, %c0_i32 : i32, i32
  }
}

</mosaic_0001>

<bundles_post_ra>
// kernel: tpu_custom_call.1
= control target key start
LH: loop header
LB: loop body
LE: loop exit
PB: predicated region body
PF: predicated region fallthrough
CT: control target
= control target key end

     0   :  { %s858_s30 = smov 0   ;;  %s931_s0 = inlined_call_operand.vmem [shape: f32[1,16], index: 0, kind: input, shape index: {}]   ;;  %s932_s1 = inlined_call_operand.vmem [shape: f32[32,16], index: 1, kind: input, shape index: {}]   ;;  %s933_s2 = inlined_call_operand.vmem [shape: f32[16,64], index: 2, kind: input, shape index: {}]   ;;  %s934_s3 = inlined_call_operand.vmem [shape: f32[1,64], index: 3, kind: input, shape index: {}]   ;;  %s935_s4 = inlined_call_operand.vmem [shape: f32[32,16], index: 4, kind: input, shape index: {}]   ;;  %s936_s5 = inlined_call_operand.vmem [shape: f32[1,16], index: 5, kind: input, shape index: {}]   ;;  %s937_s6 = inlined_call_operand.vmem [shape: f32[32,16], index: 6, kind: input, shape index: {}]   ;;  %s938_s7 = inlined_call_operand.vmem [shape: f32[1,16], index: 7, kind: input, shape index: {}]   ;;  %s939_s8 = inlined_call_operand.vmem [shape: f32[32,16], index: 8, kind: output, shape index: {0}]   ;;  %s940_s9 = inlined_call_operand.vmem [shape: f32[32,1], index: 9, kind: output, shape index: {1}]  }
   0x1 LB: > { %s707_s10 = sadd.s32 4294967295, %s802_s30   ;;  %p711_p0 = scmp.ge.s32.totalorder %s802_s30, 1  ;;  %s802_s30 = sphi %s858_s30, %s20_s30  }
   0x2   : > { %p289_p1 = scmp.lt.s32.totalorder %s802_s30, 5 }
   0x4   : > { %p290_p2 = pnand %p711_p0, %p289_p1 }
   0x5   : > { %v341_v0 = vld [vmem:[%s933_s2] sm:$0xff] (!%p290_p2)  ;;  %v342_v1 = vld [vmem:[%s933_s2 + $0x8] sm:$0xff] (!%p290_p2)  ;;  %p327_p3 = scmp.lt.s32.totalorder (!%p290_p2), %s707_s10, 3  ;;  %v804_v2 = vmov (!%p290_p2), 0.0|0.0   ;;  %vm805_vm0 = vmmov (!%p290_p2), 0   ;;  %v806_v4 = vmov (!%p290_p2), 0.0   ;;  %v598_v24 = vlaneseq (!%p290_p2) }
   0x6   : > { %293 = sbr.rel (%p290_p2) target bundleno = 604 (0x25c), region = 52  ;;  %765 = vmatprep.subr.bf16.mxu0 (!%p290_p2), %v804_v2  ;;  %v766_v3 = vpack.c.bf16 (!%p290_p2), %v342_v1, %v341_v0  ;;  %740 = vmatprep.mubr.msk.f32.mxu0 (!%p290_p2), %vm805_vm0, %v806_v4  ;;  %v425_v5 = vld [vmem:[%s935_s4] sm:$0xff] (!%p290_p2)  ;;  %v426_v6 = vld [vmem:[%s935_s4 + $0x8] sm:$0xff] (!%p290_p2)  ;;  %vm350_vm1 = vcmask (!%p290_p2), 130048   ;;  %v427_v9 = vld [vmem:[%s935_s4 + $0x10] sm:$0xff] (!%p290_p2)  ;;  %vm436_vm2 = vcmask (!%p290_p2), 261120  }
   0x7   : > { %768 = vmatprep.subr.bf16.mxu1 (!%p290_p2), %v804_v2  ;;  %v769_v7 = vpack.c.bf16 (!%p290_p2), %v426_v6, %v425_v5  ;;  %751 = vmatprep.mubr.msk.f32.mxu1 (!%p290_p2), %vm805_vm0, %v806_v4  ;;  %v428_v10 = vld [vmem:[%s935_s4 + $0x18] sm:$0xff] (!%p290_p2)  ;;  %v511_v12 = vld [vmem:[%s937_s6] sm:$0xff] (!%p290_p2)  ;;  %v512_v13 = vld [vmem:[%s937_s6 + $0x8] sm:$0xff] (!%p290_p2)  ;;  %s807_s17 = smov (!%p290_p2), 96   ;;  %v599_v29 = vshrl.u32 (!%p290_p2), %v598_v24, 7  ;;  %vm621_vm3 = vcmask (!%p290_p2), 7168  }
   0x8   : > { %767 = vmatpush3.bf16.msra.mxu0 (!%p290_p2), %v766_v3  ;;  %v772_v11 = vpack.c.bf16 (!%p290_p2), %v428_v10, %v427_v9  ;;  %v513_v14 = vld [vmem:[%s937_s6 + $0x10] sm:$0xff] (!%p290_p2)  ;;  %v775_v15 = vpack.c.bf16 (!%p290_p2), %v512_v13, %v511_v12  ;;  %v514_v16 = vld [vmem:[%s937_s6 + $0x18] sm:$0xff] (!%p290_p2)  ;;  %v715_v18 = vld [vmem:[%s934_s3] ss:$0 sm:$0xff] (!%p290_p2) }
   0x9   : > { %770 = vmatpush3.bf16.msra.mxu1 (!%p290_p2), %v769_v7  ;;  %774 = vmatprep.subr.bf16.mxu0 (!%p290_p2), %v804_v2  ;;  %v778_v17 = vpack.c.bf16 (!%p290_p2), %v514_v16, %v513_v14  ;;  %v717_v25 = vld [vmem:[%s936_s5] ss:$0 sm:$0xff] (!%p290_p2)  ;;  %v600_v31 = vsub.s32 (!%p290_p2), 0, %v599_v29 }
   0xa   : > { %771 = vmatprep.subr.bf16.mxu1 (!%p290_p2), %v804_v2  ;;  %v340_v30 = vld [vmem:[%s931_s0] sm:$0x1] (!%p290_p2) }
   0xb   : > { %v596_v32 = vsub.f32 (!%p290_p2), 1.0, %v340_v30  ;;  %v719_v39 = vld [vmem:[%s938_s7] ss:$0 sm:$0xff] (!%p290_p2)  ;;  %v601_v40 = vrot.slane (!%p290_p2), %v340_v30, %v600_v31 }
   0xd   : > { %s942_s10 = smov (!%p327_p3, %s707_s10), 3  ;;  %773 = vmatpush3.bf16.msra.mxu1 %v772_v11  ;;  %v612_v33 = vrot.slane %v596_v32, %v600_v31 }
   0xe   : > { %s880_s19 = sshll.u32 %s942_s10, 3 }
   0xf   : > { %s330_s22 = scalar_lea.vmem %s932_s1, %s880_s19  ;;  %s334_s27 = scalar_lea.vmem %s939_s8, %s880_s19 }
  0x10   : > { %v339_v8 = vld [vmem:[%s330_s22] sm:$0xff]  ;;  %s338_s10 = scalar_lea.vmem %s940_s9, %s880_s19 }
  0x11   : > { %741 = vmatmul.mubr.msk.f32.vlgmr.msra.gmra.mrb[0].mxu0 %vm350_vm1, %v339_v8  ;;  %v603_v45 = vmul.f32 %v601_v40, %v339_v8 }
  0x12   : > { %762 = vmatprep.mubr.msk.f32.mxu0 %vm805_vm0, %v806_v4  ;;  %776 = vmatpush3.bf16.msra.mxu0 %v775_v15 }
  0x13   : > { %777 = vmatprep.subr.bf16.mxu0 %v804_v2 }
  0x16   : > { %779 = vmatpush3.bf16.msra.mxu0 %v778_v17 }
  0xe4   : > { %v420_v19 = vpop.f32.mrb[0].mxu0 }
  0xe5   : > { %v421_v20 = vadd.f32 %v715_v18, %v420_v19  ;;  %v742_v21 = vpop.f32.mrb[1].mxu0 }
  0xe7   : > { %v424_v22 = vmax.f32 %v421_v20, 0.0 }
  0xe9   : > { %522 = vrot.lane.b32.xlu0 %v424_v22, %s807_s17  ;;  %752 = vmatmul.mubr.msk.f32.vlgmr.msra.gmra.mrb[0].mxu1 %vm436_vm2, %v424_v22 }
 0x15b   : > { %v523_v23 = vpop.permute.xlu0 %522 }
 0x15c   : > { %763 = vmatmul.mubr.msk.f32.vlgmr.msra.gmra.mrb[2].mxu0 %vm436_vm2, %v523_v23 }
 0x1bc   : > { %v506_v26 = vpop.f32.mrb[0].mxu1 }
 0x1bd   : > { %v507_v27 = vadd.f32 %v717_v25, %v506_v26  ;;  %v753_v28 = vpop.f32.mrb[1].mxu1 }
 0x1bf   : > { %792 = vtanh.f32 %v507_v27 }
 0x1c9   : > { %v793_v34 = vpop.eup %792 }
 0x1ca   : > { %v617_v35 = vmul.f32 %v793_v34, %v612_v33  ;;  %v604_v37 = vmul.f32 1.442695, %v793_v34 }
 0x1cc   : > { %v618_v36 = vsel %vm350_vm1, %v617_v35, 0.0  ;;  %794 = vpow2.f32 %v604_v37 }
 0x1cd   : > { %619 = vadd.xlane.f32.xlu0 %v618_v36 }
 0x1d6   : > { %v795_v38 = vpop.eup %794 }
 0x1d7   : > { %v606_v43 = vmul.f32 %v795_v38, %v339_v8 }
 0x22f   : > { %v592_v41 = vpop.f32.mrb[2].mxu0 }
 0x230   : > { %v593_v42 = vadd.f32 %v719_v39, %v592_v41  ;;  %v764_v44 = vpop.f32.mrb[3].mxu0 }
 0x232   : > { %v607_v46 = vadd.f32 %v606_v43, %v593_v42 }
 0x234   : > { %v614_v47 = vmul.f32 %v612_v33, %v607_v46 }
 0x236   : > { %v615_v48 = vadd.f32 %v614_v47, %v603_v45 }
 0x238   : > { %616 = vst.msk [vmem:[%s334_s27] sm:$0xff] %vm350_vm1, %v615_v48 }
 0x25a   : > { %v620_v49 = vpop.xlane.xlu0 %619 }
 0x25b   : > { %622 = vst.msk [vmem:[%s338_s10] sm:$0xff] %vm621_vm3, %v620_v49 }
 0x25c PF: > { %s20_s30 = sadd.s32 1, %s802_s30  }
 0x25d   : > { %p17_p4 = scmp.ge.s32.totalorder %s20_s30, 6  }
 0x25f   :  { %19 = sbr.rel (!%p17_p4) target bundleno = 1 (0x1), region = 94 }

// kernel: tpu_custom_call.1
= control target key start
LH: loop header
LB: loop body
LE: loop exit
PB: predicated region body
PF: predicated region fallthrough
CT: control target
= control target key end

     0   :  { %s858_s30 = smov 0   ;;  %s931_s0 = inlined_call_operand.vmem [shape: f32[1,16], index: 0, kind: input, shape index: {}]   ;;  %s932_s1 = inlined_call_operand.vmem [shape: f32[32,16], index: 1, kind: input, shape index: {}]   ;;  %s933_s2 = inlined_call_operand.vmem [shape: f32[16,64], index: 2, kind: input, shape index: {}]   ;;  %s934_s3 = inlined_call_operand.vmem [shape: f32[1,64], index: 3, kind: input, shape index: {}]   ;;  %s935_s4 = inlined_call_operand.vmem [shape: f32[32,16], index: 4, kind: input, shape index: {}]   ;;  %s936_s5 = inlined_call_operand.vmem [shape: f32[1,16], index: 5, kind: input, shape index: {}]   ;;  %s937_s6 = inlined_call_operand.vmem [shape: f32[32,16], index: 6, kind: input, shape index: {}]   ;;  %s938_s7 = inlined_call_operand.vmem [shape: f32[1,16], index: 7, kind: input, shape index: {}]   ;;  %s939_s8 = inlined_call_operand.vmem [shape: f32[32,16], index: 8, kind: output, shape index: {0}]   ;;  %s940_s9 = inlined_call_operand.vmem [shape: f32[32,1], index: 9, kind: output, shape index: {1}]  }
   0x1 LB: > { %s707_s10 = sadd.s32 4294967295, %s802_s30   ;;  %p711_p0 = scmp.ge.s32.totalorder %s802_s30, 1  ;;  %s802_s30 = sphi %s858_s30, %s20_s30  }
   0x2   : > { %p289_p1 = scmp.lt.s32.totalorder %s802_s30, 5 }
   0x4   : > { %p290_p2 = pnand %p711_p0, %p289_p1 }
   0x5   : > { %v341_v0 = vld [vmem:[%s933_s2] sm:$0xff] (!%p290_p2)  ;;  %v342_v1 = vld [vmem:[%s933_s2 + $0x8] sm:$0xff] (!%p290_p2)  ;;  %p327_p3 = scmp.lt.s32.totalorder (!%p290_p2), %s707_s10, 3  ;;  %v804_v2 = vmov (!%p290_p2), 0.0|0.0   ;;  %vm805_vm0 = vmmov (!%p290_p2), 0   ;;  %v806_v4 = vmov (!%p290_p2), 0.0   ;;  %v598_v24 = vlaneseq (!%p290_p2) }
   0x6   : > { %293 = sbr.rel (%p290_p2) target bundleno = 604 (0x25c), region = 52  ;;  %765 = vmatprep.subr.bf16.mxu0 (!%p290_p2), %v804_v2  ;;  %v766_v3 = vpack.c.bf16 (!%p290_p2), %v342_v1, %v341_v0  ;;  %740 = vmatprep.mubr.msk.f32.mxu0 (!%p290_p2), %vm805_vm0, %v806_v4  ;;  %v425_v5 = vld [vmem:[%s935_s4] sm:$0xff] (!%p290_p2)  ;;  %v426_v6 = vld [vmem:[%s935_s4 + $0x8] sm:$0xff] (!%p290_p2)  ;;  %vm350_vm1 = vcmask (!%p290_p2), 130048   ;;  %v427_v9 = vld [vmem:[%s935_s4 + $0x10] sm:$0xff] (!%p290_p2)  ;;  %vm436_vm2 = vcmask (!%p290_p2), 261120  }
   0x7   : > { %768 = vmatprep.subr.bf16.mxu1 (!%p290_p2), %v804_v2  ;;  %v769_v7 = vpack.c.bf16 (!%p290_p2), %v426_v6, %v425_v5  ;;  %751 = vmatprep.mubr.msk.f32.mxu1 (!%p290_p2), %vm805_vm0, %v806_v4  ;;  %v428_v10 = vld [vmem:[%s935_s4 + $0x18] sm:$0xff] (!%p290_p2)  ;;  %v511_v12 = vld [vmem:[%s937_s6] sm:$0xff] (!%p290_p2)  ;;  %v512_v13 = vld [vmem:[%s937_s6 + $0x8] sm:$0xff] (!%p290_p2)  ;;  %s807_s17 = smov (!%p290_p2), 96   ;;  %v599_v29 = vshrl.u32 (!%p290_p2), %v598_v24, 7  ;;  %vm621_vm3 = vcmask (!%p290_p2), 7168  }
   0x8   : > { %767 = vmatpush3.bf16.msra.mxu0 (!%p290_p2), %v766_v3  ;;  %v772_v11 = vpack.c.bf16 (!%p290_p2), %v428_v10, %v427_v9  ;;  %v513_v14 = vld [vmem:[%s937_s6 + $0x10] sm:$0xff] (!%p290_p2)  ;;  %v775_v15 = vpack.c.bf16 (!%p290_p2), %v512_v13, %v511_v12  ;;  %v514_v16 = vld [vmem:[%s937_s6 + $0x18] sm:$0xff] (!%p290_p2)  ;;  %v715_v18 = vld [vmem:[%s934_s3] ss:$0 sm:$0xff] (!%p290_p2) }
   0x9   : > { %770 = vmatpush3.bf16.msra.mxu1 (!%p290_p2), %v769_v7  ;;  %774 = vmatprep.subr.bf16.mxu0 (!%p290_p2), %v804_v2  ;;  %v778_v17 = vpack.c.bf16 (!%p290_p2), %v514_v16, %v513_v14  ;;  %v717_v25 = vld [vmem:[%s936_s5] ss:$0 sm:$0xff] (!%p290_p2)  ;;  %v600_v31 = vsub.s32 (!%p290_p2), 0, %v599_v29 }
   0xa   : > { %771 = vmatprep.subr.bf16.mxu1 (!%p290_p2), %v804_v2  ;;  %v340_v30 = vld [vmem:[%s931_s0] sm:$0x1] (!%p290_p2) }
   0xb   : > { %v596_v32 = vsub.f32 (!%p290_p2), 1.0, %v340_v30  ;;  %v719_v39 = vld [vmem:[%s938_s7] ss:$0 sm:$0xff] (!%p290_p2)  ;;  %v601_v40 = vrot.slane (!%p290_p2), %v340_v30, %v600_v31 }
   0xd   : > { %s942_s10 = smov (!%p327_p3, %s707_s10), 3  ;;  %773 = vmatpush3.bf16.msra.mxu1 %v772_v11  ;;  %v612_v33 = vrot.slane %v596_v32, %v600_v31 }
   0xe   : > { %s880_s19 = sshll.u32 %s942_s10, 3 }
   0xf   : > { %s330_s22 = scalar_lea.vmem %s932_s1, %s880_s19  ;;  %s334_s27 = scalar_lea.vmem %s939_s8, %s880_s19 }
  0x10   : > { %v339_v8 = vld [vmem:[%s330_s22] sm:$0xff]  ;;  %s338_s10 = scalar_lea.vmem %s940_s9, %s880_s19 }
  0x11   : > { %741 = vmatmul.mubr.msk.f32.vlgmr.msra.gmra.mrb[0].mxu0 %vm350_vm1, %v339_v8  ;;  %v603_v45 = vmul.f32 %v601_v40, %v339_v8 }
  0x12   : > { %762 = vmatprep.mubr.msk.f32.mxu0 %vm805_vm0, %v806_v4  ;;  %776 = vmatpush3.bf16.msra.mxu0 %v775_v15 }
  0x13   : > { %777 = vmatprep.subr.bf16.mxu0 %v804_v2 }
  0x16   : > { %779 = vmatpush3.bf16.msra.mxu0 %v778_v17 }
  0xe4   : > { %v420_v19 = vpop.f32.mrb[0].mxu0 }
  0xe5   : > { %v421_v20 = vadd.f32 %v715_v18, %v420_v19  ;;  %v742_v21 = vpop.f32.mrb[1].mxu0 }
  0xe7   : > { %v424_v22 = vmax.f32 %v421_v20, 0.0 }
  0xe9   : > { %522 = vrot.lane.b32.xlu0 %v424_v22, %s807_s17  ;;  %752 = vmatmul.mubr.msk.f32.vlgmr.msra.gmra.mrb[0].mxu1 %vm436_vm2, %v424_v22 }
 0x15b   : > { %v523_v23 = vpop.permute.xlu0 %522 }
 0x15c   : > { %763 = vmatmul.mubr.msk.f32.vlgmr.msra.gmra.mrb[2].mxu0 %vm436_vm2, %v523_v23 }
 0x1bc   : > { %v506_v26 = vpop.f32.mrb[0].mxu1 }
 0x1bd   : > { %v507_v27 = vadd.f32 %v717_v25, %v506_v26  ;;  %v753_v28 = vpop.f32.mrb[1].mxu1 }
 0x1bf   : > { %792 = vtanh.f32 %v507_v27 }
 0x1c9   : > { %v793_v34 = vpop.eup %792 }
 0x1ca   : > { %v617_v35 = vmul.f32 %v793_v34, %v612_v33  ;;  %v604_v37 = vmul.f32 1.442695, %v793_v34 }
 0x1cc   : > { %v618_v36 = vsel %vm350_vm1, %v617_v35, 0.0  ;;  %794 = vpow2.f32 %v604_v37 }
 0x1cd   : > { %619 = vadd.xlane.f32.xlu0 %v618_v36 }
 0x1d6   : > { %v795_v38 = vpop.eup %794 }
 0x1d7   : > { %v606_v43 = vmul.f32 %v795_v38, %v339_v8 }
 0x22f   : > { %v592_v41 = vpop.f32.mrb[2].mxu0 }
 0x230   : > { %v593_v42 = vadd.f32 %v719_v39, %v592_v41  ;;  %v764_v44 = vpop.f32.mrb[3].mxu0 }
 0x232   : > { %v607_v46 = vadd.f32 %v606_v43, %v593_v42 }
 0x234   : > { %v614_v47 = vmul.f32 %v612_v33, %v607_v46 }
 0x236   : > { %v615_v48 = vadd.f32 %v614_v47, %v603_v45 }
 0x238   : > { %616 = vst.msk [vmem:[%s334_s27] sm:$0xff] %vm350_vm1, %v615_v48 }
 0x25a   : > { %v620_v49 = vpop.xlane.xlu0 %619 }
 0x25b   : > { %622 = vst.msk [vmem:[%s338_s10] sm:$0xff] %vm621_vm3, %v620_v49 }
 0x25c PF: > { %s20_s30 = sadd.s32 1, %s802_s30  }
 0x25d   : > { %p17_p4 = scmp.ge.s32.totalorder %s20_s30, 6  }
 0x25f   :  { %19 = sbr.rel (!%p17_p4) target bundleno = 1 (0x1), region = 94 }

</bundles_post_ra>
